<compile_context>
chip_gen: v5e
topology: v5e:2x2
jax: 0.10.0
libtpu: 0.0.40
codegen_flags: <defaults>
</compile_context>

<pallas_src>
import functools

import jax
import jax.numpy as jnp
from jax.experimental import pallas as pl
from jax.experimental.pallas import tpu as pltpu


# ----------------------------------------------------------------------------
# Fused Pallas kernel
# ----------------------------------------------------------------------------
def _full_spec(shape):
    # Single grid point; full-array block (everything here is tiny -> VMEM).
    return pl.BlockSpec(shape, lambda i: tuple(0 for _ in shape))


def _make_fused_kernel(pooling):
    avg = (pooling == "avg")

    def kernel(obj_ref, pred_ref, idx_ref, w_ref, b_ref, out_ref):
        f32 = jnp.float32
        mxu = w_ref.dtype                 # MXU operand dtype (f32 here; bf16 ok)
        bo = obj_ref.shape[0]             # B * O   (object rows)
        bt = pred_ref.shape[0]            # B * T   (triple rows)
        d = w_ref.shape[1]                # Din == H == Dout (packed path)

        def w(k):   # static, sublane-aligned view of the packed weight slab
            return w_ref[k * d:(k + 1) * d, :]

        def b(k):   # (1, d) bias row; biases stay f32 for the VPU adds
            return b_ref[k:k + 1, :].astype(f32)

        # lane-major index rows, all from the single packed (8, BT) int array
        gcol = idx_ref[0:1, :]            # gather source rows   (1, BT)
        scol = idx_ref[1:2, :]            # subject scatter rows (1, BT)
        ocol = idx_ref[2:3, :]            # object scatter rows  (1, BT)

        row_ids = jax.lax.broadcasted_iota(jnp.int32, (bo, bt), 0)

        # ---- gather (reference uses s_idx[1] for BOTH subject and object) --
        # one-hot^T (BO, BT) built in-register, contracted against obj dim 0
        # on the MXU (transposed-lhs dot_general).
        gath_t = jnp.where(row_ids == gcol, 1.0, 0.0).astype(mxu)
        s_in = jax.lax.dot_general(
            gath_t, obj_ref[...].astype(mxu),
            dimension_numbers=(((0,), (0,)), ((), ())),
            preferred_element_type=f32)                          # (BT, Din)

        # ---- net1 layer 1 with folded subject+object weights ----
        h1 = jnp.dot(s_in.astype(mxu), w(0), preferred_element_type=f32)
        h1 = h1 + jnp.dot(pred_ref[...].astype(mxu), w(1),
                          preferred_element_type=f32)
        h1 = jnp.maximum(h1 + b(0), 0.0)                          # (BT, H) f32

        # ---- net1 layer 2: three lane-dense column GEMMs (s | p | o) ----
        h1m = h1.astype(mxu)
        s_part = jnp.maximum(
            jnp.dot(h1m, w(2), preferred_element_type=f32) + b(1), 0.0)
        p_part = jnp.maximum(
            jnp.dot(h1m, w(3), preferred_element_type=f32) + b(2), 0.0)
        o_part = jnp.maximum(
            jnp.dot(h1m, w(4), preferred_element_type=f32) + b(3), 0.0)

        # ---- dim-0 scatter_add pooling as one-hot matmuls ----
        # pooled[flat(b', o'), :] += src[flat(b, t), :], flat row = idx*O + t
        scat_s = jnp.where(row_ids == scol, 1.0, 0.0)             # (BO, BT)
        scat_o = jnp.where(row_ids == ocol, 1.0, 0.0)             # (BO, BT)
        pooled = (jnp.dot(scat_s.astype(mxu), s_part.astype(mxu),
                          preferred_element_type=f32)
                  + jnp.dot(scat_o.astype(mxu), o_part.astype(mxu),
                            preferred_element_type=f32))          # (BO, H)

        if avg:
            counts = jnp.sum(scat_s + scat_o, axis=1, keepdims=True)  # (BO,1)
            pooled = pooled * pl.reciprocal(jnp.maximum(counts, 1.0),
                                            approx=True)          # EUP slot

        # ---- net2 ----
        h2 = jnp.maximum(
            jnp.dot(pooled.astype(mxu), w(5), preferred_element_type=f32)
            + b(4), 0.0)
        obj_out = jnp.maximum(
            jnp.dot(h2.astype(mxu), w(6), preferred_element_type=f32)
            + b(5), 0.0)

        # ---- single lane-dense writeback slab: [obj_out | pred_out] ----
        if bt < bo:   # static (trace-time) row padding so both halves match
            p_slab = jnp.concatenate(
                [p_part, jnp.zeros((bo - bt, d), f32)], axis=0)
        else:
            p_slab = p_part
        out_ref[...] = jnp.concatenate([obj_out, p_slab],
                                       axis=1).astype(out_ref.dtype)

    return kernel


def fused_forward(obj_flat, pred_flat, idx_pack, wpack, bpack, *, pooling):
    bo = obj_flat.shape[0]
    d = wpack.shape[1]
    inputs = (obj_flat, pred_flat, idx_pack, wpack, bpack)
    # NOTE(scaling): at realistic sizes, add a leading "parallel" batch/row
    # grid axis (>=256 rows per step on v6e/v7x, 128 on v5e) so both v7x
    # TensorCores are used, keep the wpack/bpack index_maps constant so the
    # weights stay VMEM-resident across steps, and consider pl.Buffered(3)
    # on the streamed activation inputs.
    return pl.pallas_call(
        _make_fused_kernel(pooling),
        grid=(1,),
        in_specs=[_full_spec(x.shape) for x in inputs],
        out_specs=_full_spec((bo, 2 * d)),
        out_shape=jax.ShapeDtypeStruct((bo, 2 * d), obj_flat.dtype),
        compiler_params=pltpu.CompilerParams(
            dimension_semantics=("arbitrary",)),
    )(*inputs)


# ----------------------------------------------------------------------------
# Parameter construction (deterministic, Kaiming-normal like _init_weights)
# ----------------------------------------------------------------------------
def make_params(key, input_dim_obj, input_dim_pred, output_dim, hidden_dim):
    d_tot = 2 * input_dim_obj + input_dim_pred
    net1_dims = [d_tot, hidden_dim, 2 * hidden_dim + output_dim]
    net2_dims = [hidden_dim, hidden_dim, output_dim]

    def linear(key, d_in, d_out):
        kw, kb = jax.random.split(key)
        # kaiming_normal_ (fan_in, a=0) -> std = sqrt(2 / fan_in)
        w = jax.random.normal(kw, (d_in, d_out), jnp.float32) * jnp.sqrt(2.0 / d_in)
        bound = 1.0 / jnp.sqrt(float(d_in))
        b = jax.random.uniform(kb, (1, d_out), jnp.float32, -bound, bound)
        return w, b  # stored (in, out) so x @ w + b

    keys = jax.random.split(key, 4)
    w1a, b1a = linear(keys[0], net1_dims[0], net1_dims[1])
    w1b, b1b = linear(keys[1], net1_dims[1], net1_dims[2])
    w2a, b2a = linear(keys[2], net2_dims[0], net2_dims[1])
    w2b, b2b = linear(keys[3], net2_dims[1], net2_dims[2])
    return dict(w1a=w1a, b1a=b1a, w1b=w1b, b1b=b1b,
                w2a=w2a, b2a=b2a, w2b=w2b, b2b=b2b)


def prep_kernel_params(params, input_dim_obj, input_dim_pred, hidden_dim,
                       output_dim, mxu_dtype=jnp.float32):
    """One-time weight folding/splitting/packing, hoisted out of the per-call
    jitted path (perf-review item 2).  Run once, store, pass to forward."""
    din, dp, h, dout = input_dim_obj, input_dim_pred, hidden_dim, output_dim
    assert din == dp == h == dout, "packed-weight kernel assumes equal dims"
    d = h
    w1a, b1a = params["w1a"], params["b1a"]
    w1b, b1b = params["w1b"], params["b1b"]
    # net1 layer 1: input is [s | p | o] with s == o  ->  fold s & o weights.
    w1s = w1a[:din] + w1a[din + dp:]
    w1p = w1a[din:din + dp]
    # net1 layer 2: split output columns so s / p / o are lane-dense.
    w1bs, w1bp, w1bo = w1b[:, :h], w1b[:, h:h + dout], w1b[:, h + dout:]
    b1bs, b1bp, b1bo = b1b[:, :h], b1b[:, h:h + dout], b1b[:, h + dout:]
    wpack = jnp.concatenate(
        [w1s, w1p, w1bs, w1bp, w1bo, params["w2a"], params["w2b"]],
        axis=0).astype(mxu_dtype)                                  # (7*d, d)
    bpack = jnp.concatenate(
        [b1a, b1bs, b1bp, b1bo, params["b2a"], params["b2b"],
         jnp.zeros((2, d), jnp.float32)], axis=0)                  # (8, d) f32
    return dict(wpack=wpack, bpack=bpack)


# ----------------------------------------------------------------------------
# Forward pass (reproduces BatchGraphTripleConv.forward semantics)
# ----------------------------------------------------------------------------
@functools.partial(jax.jit, static_argnames=("pooling",))
def batch_graph_triple_conv(obj_vecs, pred_vecs, edges, kparams, pooling="avg"):
    B, O, Din_obj = obj_vecs.shape
    T = pred_vecs.shape[1]
    d = kparams["wpack"].shape[1]      # == H == Dout (static, from shape)
    assert T <= O                       # required by the reference scatter

    s_idx = edges[:, :, 0].astype(jnp.int32)          # (B, T)
    o_idx = edges[:, :, 2].astype(jnp.int32)          # (B, T)
    t_ar = jnp.arange(T, dtype=jnp.int32)
    b_ar = jnp.arange(B, dtype=jnp.int32)

    # NOTE: reference gathers BOTH subject and object rows with s_idx[1]
    # (batch element 1's subject indices) -- reproduced exactly.
    gcol = (b_ar[:, None] * O + s_idx[1][None, :]).reshape(1, B * T)
    # reference scatter_add runs along dim 0: pooled[idx[b,t], t, :] += src[b,t]
    # -> flattened (B*O) row index = idx * O + t.
    # TODO(synk): PyTorch errors on out-of-range scatter indices; the one-hot
    # matmul silently drops them (indices here stay in range like the reference).
    scol = (s_idx * O + t_ar[None, :]).reshape(1, B * T)
    ocol = (o_idx * O + t_ar[None, :]).reshape(1, B * T)
    idx_pack = jnp.concatenate(
        [gcol, scol, ocol, jnp.zeros((5, B * T), jnp.int32)], axis=0)  # (8,BT)

    slab = fused_forward(obj_vecs.reshape(B * O, Din_obj),
                         pred_vecs.reshape(B * T, -1),
                         idx_pack, kparams["wpack"], kparams["bpack"],
                         pooling=pooling)
    new_obj = slab[:, :d].reshape(B, O, d)
    new_p = slab[:B * T, d:].reshape(B, T, d)
    return new_obj, new_p


# ----------------------------------------------------------------------------
# Pure-JAX reference (mirrors the PyTorch module literally) for verification
# ----------------------------------------------------------------------------
def _reference_forward(obj_vecs, pred_vecs, edges, params, pooling="avg"):
    B, O, _ = obj_vecs.shape
    T = pred_vecs.shape[1]
    H = params["w1a"].shape[1]
    Dout = params["w2b"].shape[1]

    def mlp(x, w1, b1, w2, b2):
        h = jnp.maximum(x @ w1 + b1, 0.0)
        return jnp.maximum(h @ w2 + b2, 0.0)

    s_idx = edges[:, :, 0]
    o_idx = edges[:, :, 2]
    cur_s = obj_vecs[:, s_idx[1], :]
    cur_o = obj_vecs[:, s_idx[1], :]
    cur_t = jnp.concatenate([cur_s, pred_vecs, cur_o], axis=-1)
    new_t = mlp(cur_t, params["w1a"], params["b1a"], params["w1b"], params["b1b"])
    new_s = new_t[..., :H]
    new_p = new_t[..., H:H + Dout]
    new_o = new_t[..., H + Dout:]
    t_ar = jnp.arange(T)[None, :]
    pooled = jnp.zeros((B, O, H), obj_vecs.dtype)
    pooled = pooled.at[s_idx, t_ar, :].add(new_s)
    pooled = pooled.at[o_idx, t_ar, :].add(new_o)
    if pooling == "avg":
        counts = jnp.zeros((B, O), obj_vecs.dtype)
        counts = counts.at[s_idx, t_ar].add(1.0)
        counts = counts.at[o_idx, t_ar].add(1.0)
        pooled = pooled / jnp.maximum(counts, 1.0)[..., None]
    new_obj = mlp(pooled, params["w2a"], params["b2a"], params["w2b"], params["b2b"])
    return new_obj, new_p


# ----------------------------------------------------------------------------
if __name__ == "__main__":
    B, O, T = 4, 8, 8                       # batch, objects, triples (T <= O)
    Din_obj, Din_pred, H, Dout = 64, 64, 64, 64

    key = jax.random.PRNGKey(0)
    k_obj, k_pred, k_edge, k_par = jax.random.split(key, 4)

    obj_vecs = jax.random.normal(k_obj, (B, O, Din_obj), jnp.float32)
    pred_vecs = jax.random.normal(k_pred, (B, T, Din_pred), jnp.float32)
    # Edge indices drawn in [0, B): valid for the reference module's dim-0
    # scatter_add and also valid object indices since B <= O.
    edges = jax.random.randint(k_edge, (B, T, 3), 0, B, jnp.int32)

    params = make_params(k_par, Din_obj, Din_pred, Dout, H)
    # One-time packing, hoisted out of the per-call path.  On v6e/v7x at
    # compute-bound sizes, pass mxu_dtype=jnp.bfloat16 (f32 accumulation kept).
    kparams = prep_kernel_params(params, Din_obj, Din_pred, H, Dout,
                                 mxu_dtype=jnp.float32)

    new_obj_vecs, new_p_vecs = batch_graph_triple_conv(
        obj_vecs, pred_vecs, edges, kparams, pooling="avg"
    )
    jax.block_until_ready((new_obj_vecs, new_p_vecs))

    assert new_obj_vecs.shape == (B, O, Dout)
    assert new_p_vecs.shape == (B, T, Dout)

    ref_obj, ref_p = _reference_forward(obj_vecs, pred_vecs, edges, params, "avg")
    # Tolerance widened from 2e-3 to 1e-2 to cover the approx (EUP) reciprocal
    # in the avg-pool divide; all matmuls/elementwise math remain f32.
    assert jnp.allclose(new_obj_vecs, ref_obj, rtol=1e-2, atol=1e-2)
    assert jnp.allclose(new_p_vecs, ref_p, rtol=1e-2, atol=1e-2)

    print("KERNEL_OK")
</pallas_src>

<mosaic_0001>
module attributes {stable_mosaic.version = 11 : i64} {
  func.func @kernel(%arg0: i32, %arg1: memref<32x64xf32, #tpu.memory_space<vmem>>, %arg2: memref<32x64xf32, #tpu.memory_space<vmem>>, %arg3: memref<8x32xi32, #tpu.memory_space<vmem>>, %arg4: memref<448x64xf32, #tpu.memory_space<vmem>>, %arg5: memref<8x64xf32, #tpu.memory_space<vmem>>, %arg6: memref<32x128xf32, #tpu.memory_space<vmem>>) attributes {dimension_semantics = [#tpu.dimension_semantics<arbitrary>], iteration_bounds = array<i64: 1>, scalar_prefetch = 0 : i64, scratch_operands = 0 : i64, tpu.core_type = #tpu.core_type<tc>, window_params = [{pipeline_mode = #tpu.pipeline_mode<synchronous>, transform_indices = @transform_0, window_bounds = array<i64: 32, 64>}, {pipeline_mode = #tpu.pipeline_mode<synchronous>, transform_indices = @transform_1, window_bounds = array<i64: 32, 64>}, {pipeline_mode = #tpu.pipeline_mode<synchronous>, transform_indices = @transform_2, window_bounds = array<i64: 8, 32>}, {pipeline_mode = #tpu.pipeline_mode<synchronous>, transform_indices = @transform_3, window_bounds = array<i64: 448, 64>}, {pipeline_mode = #tpu.pipeline_mode<synchronous>, transform_indices = @transform_4, window_bounds = array<i64: 8, 64>}, {pipeline_mode = #tpu.pipeline_mode<synchronous>, transform_indices = @transform_5, window_bounds = array<i64: 32, 128>}]} {
    %c0 = arith.constant 0 : index
    %c0_0 = arith.constant 0 : index
    %0 = vector.load %arg3[%c0, %c0_0] : memref<8x32xi32, #tpu.memory_space<vmem>>, vector<1x32xi32>
    %c1 = arith.constant 1 : index
    %c0_1 = arith.constant 0 : index
    %1 = vector.load %arg3[%c1, %c0_1] : memref<8x32xi32, #tpu.memory_space<vmem>>, vector<1x32xi32>
    %c2 = arith.constant 2 : index
    %c0_2 = arith.constant 0 : index
    %2 = vector.load %arg3[%c2, %c0_2] : memref<8x32xi32, #tpu.memory_space<vmem>>, vector<1x32xi32>
    %3 = tpu.iota {dimensions = array<i32: 0>} : vector<32x32xi32>
    %4 = vector.broadcast %0 : vector<1x32xi32> to vector<32x32xi32>
    %5 = arith.cmpi eq, %3, %4 : vector<32x32xi32>
    %cst = arith.constant 1.000000e+00 : f32
    %cst_3 = arith.constant 0.000000e+00 : f32
    %6 = vector.broadcast %cst : f32 to vector<32x32xf32>
    %7 = vector.broadcast %cst_3 : f32 to vector<32x32xf32>
    %8 = arith.select %5, %6, %7 : vector<32x32xi1>, vector<32x32xf32>
    %c0_4 = arith.constant 0 : index
    %c0_5 = arith.constant 0 : index
    %9 = vector.load %arg1[%c0_4, %c0_5] : memref<32x64xf32, #tpu.memory_space<vmem>>, vector<32x64xf32>
    %cst_6 = arith.constant dense<0.000000e+00> : vector<32x64xf32>
    %10 = tpu.matmul %8, %9, %cst_6 {dimension_numbers = #tpu.dot_dimension_numbers<[0], [0], [1], [1], [0, 1, 1, 1], [], []>} : vector<32x32xf32>, vector<32x64xf32>, vector<32x64xf32> -> vector<32x64xf32>
    %c0_7 = arith.constant 0 : index
    %c0_8 = arith.constant 0 : index
    %11 = vector.load %arg4[%c0_7, %c0_8] : memref<448x64xf32, #tpu.memory_space<vmem>>, vector<64x64xf32>
    %cst_9 = arith.constant dense<0.000000e+00> : vector<32x64xf32>
    %12 = tpu.matmul %10, %11, %cst_9 {dimension_numbers = #tpu.dot_dimension_numbers<[1], [0], [0], [1], [0, 0, 1, 1], [], []>} : vector<32x64xf32>, vector<64x64xf32>, vector<32x64xf32> -> vector<32x64xf32>
    %c0_10 = arith.constant 0 : index
    %c0_11 = arith.constant 0 : index
    %13 = vector.load %arg2[%c0_10, %c0_11] : memref<32x64xf32, #tpu.memory_space<vmem>>, vector<32x64xf32>
    %c64 = arith.constant 64 : index
    %c0_12 = arith.constant 0 : index
    %14 = vector.load %arg4[%c64, %c0_12] : memref<448x64xf32, #tpu.memory_space<vmem>>, vector<64x64xf32>
    %cst_13 = arith.constant dense<0.000000e+00> : vector<32x64xf32>
    %15 = tpu.matmul %13, %14, %cst_13 {dimension_numbers = #tpu.dot_dimension_numbers<[1], [0], [0], [1], [0, 0, 1, 1], [], []>} : vector<32x64xf32>, vector<64x64xf32>, vector<32x64xf32> -> vector<32x64xf32>
    %16 = arith.addf %12, %15 : vector<32x64xf32>
    %c0_14 = arith.constant 0 : index
    %c0_15 = arith.constant 0 : index
    %17 = vector.load %arg5[%c0_14, %c0_15] : memref<8x64xf32, #tpu.memory_space<vmem>>, vector<1x64xf32>
    %18 = vector.broadcast %17 : vector<1x64xf32> to vector<32x64xf32>
    %19 = arith.addf %16, %18 : vector<32x64xf32>
    %cst_16 = arith.constant 0.000000e+00 : f32
    %20 = vector.broadcast %cst_16 : f32 to vector<32x64xf32>
    %21 = arith.maximumf %19, %20 : vector<32x64xf32>
    %c128 = arith.constant 128 : index
    %c0_17 = arith.constant 0 : index
    %22 = vector.load %arg4[%c128, %c0_17] : memref<448x64xf32, #tpu.memory_space<vmem>>, vector<64x64xf32>
    %cst_18 = arith.constant dense<0.000000e+00> : vector<32x64xf32>
    %23 = tpu.matmul %21, %22, %cst_18 {dimension_numbers = #tpu.dot_dimension_numbers<[1], [0], [0], [1], [0, 0, 1, 1], [], []>} : vector<32x64xf32>, vector<64x64xf32>, vector<32x64xf32> -> vector<32x64xf32>
    %c1_19 = arith.constant 1 : index
    %c0_20 = arith.constant 0 : index
    %24 = vector.load %arg5[%c1_19, %c0_20] : memref<8x64xf32, #tpu.memory_space<vmem>>, vector<1x64xf32>
    %25 = vector.broadcast %24 : vector<1x64xf32> to vector<32x64xf32>
    %26 = arith.addf %23, %25 : vector<32x64xf32>
    %cst_21 = arith.constant 0.000000e+00 : f32
    %27 = vector.broadcast %cst_21 : f32 to vector<32x64xf32>
    %28 = arith.maximumf %26, %27 : vector<32x64xf32>
    %c192 = arith.constant 192 : index
    %c0_22 = arith.constant 0 : index
    %29 = vector.load %arg4[%c192, %c0_22] : memref<448x64xf32, #tpu.memory_space<vmem>>, vector<64x64xf32>
    %cst_23 = arith.constant dense<0.000000e+00> : vector<32x64xf32>
    %30 = tpu.matmul %21, %29, %cst_23 {dimension_numbers = #tpu.dot_dimension_numbers<[1], [0], [0], [1], [0, 0, 1, 1], [], []>} : vector<32x64xf32>, vector<64x64xf32>, vector<32x64xf32> -> vector<32x64xf32>
    %c2_24 = arith.constant 2 : index
    %c0_25 = arith.constant 0 : index
    %31 = vector.load %arg5[%c2_24, %c0_25] : memref<8x64xf32, #tpu.memory_space<vmem>>, vector<1x64xf32>
    %32 = vector.broadcast %31 : vector<1x64xf32> to vector<32x64xf32>
    %33 = arith.addf %30, %32 : vector<32x64xf32>
    %cst_26 = arith.constant 0.000000e+00 : f32
    %34 = vector.broadcast %cst_26 : f32 to vector<32x64xf32>
    %35 = arith.maximumf %33, %34 : vector<32x64xf32>
    %c256 = arith.constant 256 : index
    %c0_27 = arith.constant 0 : index
    %36 = vector.load %arg4[%c256, %c0_27] : memref<448x64xf32, #tpu.memory_space<vmem>>, vector<64x64xf32>
    %cst_28 = arith.constant dense<0.000000e+00> : vector<32x64xf32>
    %37 = tpu.matmul %21, %36, %cst_28 {dimension_numbers = #tpu.dot_dimension_numbers<[1], [0], [0], [1], [0, 0, 1, 1], [], []>} : vector<32x64xf32>, vector<64x64xf32>, vector<32x64xf32> -> vector<32x64xf32>
    %c3 = arith.constant 3 : index
    %c0_29 = arith.constant 0 : index
    %38 = vector.load %arg5[%c3, %c0_29] : memref<8x64xf32, #tpu.memory_space<vmem>>, vector<1x64xf32>
    %39 = vector.broadcast %38 : vector<1x64xf32> to vector<32x64xf32>
    %40 = arith.addf %37, %39 : vector<32x64xf32>
    %cst_30 = arith.constant 0.000000e+00 : f32
    %41 = vector.broadcast %cst_30 : f32 to vector<32x64xf32>
    %42 = arith.maximumf %40, %41 : vector<32x64xf32>
    %43 = vector.broadcast %1 : vector<1x32xi32> to vector<32x32xi32>
    %44 = arith.cmpi eq, %3, %43 : vector<32x32xi32>
    %cst_31 = arith.constant 1.000000e+00 : f32
    %cst_32 = arith.constant 0.000000e+00 : f32
    %45 = vector.broadcast %cst_31 : f32 to vector<32x32xf32>
    %46 = vector.broadcast %cst_32 : f32 to vector<32x32xf32>
    %47 = arith.select %44, %45, %46 : vector<32x32xi1>, vector<32x32xf32>
    %48 = vector.broadcast %2 : vector<1x32xi32> to vector<32x32xi32>
    %49 = arith.cmpi eq, %3, %48 : vector<32x32xi32>
    %cst_33 = arith.constant 1.000000e+00 : f32
    %cst_34 = arith.constant 0.000000e+00 : f32
    %50 = vector.broadcast %cst_33 : f32 to vector<32x32xf32>
    %51 = vector.broadcast %cst_34 : f32 to vector<32x32xf32>
    %52 = arith.select %49, %50, %51 : vector<32x32xi1>, vector<32x32xf32>
    %cst_35 = arith.constant dense<0.000000e+00> : vector<32x64xf32>
    %53 = tpu.matmul %47, %28, %cst_35 {dimension_numbers = #tpu.dot_dimension_numbers<[1], [0], [0], [1], [0, 0, 1, 1], [], []>} : vector<32x32xf32>, vector<32x64xf32>, vector<32x64xf32> -> vector<32x64xf32>
    %cst_36 = arith.constant dense<0.000000e+00> : vector<32x64xf32>
    %54 = tpu.matmul %52, %42, %cst_36 {dimension_numbers = #tpu.dot_dimension_numbers<[1], [0], [0], [1], [0, 0, 1, 1], [], []>} : vector<32x32xf32>, vector<32x64xf32>, vector<32x64xf32> -> vector<32x64xf32>
    %55 = arith.addf %53, %54 : vector<32x64xf32>
    %56 = arith.addf %47, %52 : vector<32x32xf32>
    %cst_37 = arith.constant dense<0.000000e+00> : vector<32xf32>
    %57 = vector.multi_reduction <add>, %56, %cst_37 [1] : vector<32x32xf32> to vector<32xf32>
    %58 = vector.shape_cast %57 : vector<32xf32> to vector<32x1xf32>
    %cst_38 = arith.constant 1.000000e+00 : f32
    %59 = vector.broadcast %cst_38 : f32 to vector<32x1xf32>
    %60 = arith.maximumf %58, %59 : vector<32x1xf32>
    %61 = tpu.reciprocal %60 {approx = true} : vector<32x1xf32> -> vector<32x1xf32>
    %62 = vector.broadcast %61 : vector<32x1xf32> to vector<32x64xf32>
    %63 = arith.mulf %55, %62 : vector<32x64xf32>
    %c320 = arith.constant 320 : index
    %c0_39 = arith.constant 0 : index
    %64 = vector.load %arg4[%c320, %c0_39] : memref<448x64xf32, #tpu.memory_space<vmem>>, vector<64x64xf32>
    %cst_40 = arith.constant dense<0.000000e+00> : vector<32x64xf32>
    %65 = tpu.matmul %63, %64, %cst_40 {dimension_numbers = #tpu.dot_dimension_numbers<[1], [0], [0], [1], [0, 0, 1, 1], [], []>} : vector<32x64xf32>, vector<64x64xf32>, vector<32x64xf32> -> vector<32x64xf32>
    %c4 = arith.constant 4 : index
    %c0_41 = arith.constant 0 : index
    %66 = vector.load %arg5[%c4, %c0_41] : memref<8x64xf32, #tpu.memory_space<vmem>>, vector<1x64xf32>
    %67 = vector.broadcast %66 : vector<1x64xf32> to vector<32x64xf32>
    %68 = arith.addf %65, %67 : vector<32x64xf32>
    %cst_42 = arith.constant 0.000000e+00 : f32
    %69 = vector.broadcast %cst_42 : f32 to vector<32x64xf32>
    %70 = arith.maximumf %68, %69 : vector<32x64xf32>
    %c384 = arith.constant 384 : index
    %c0_43 = arith.constant 0 : index
    %71 = vector.load %arg4[%c384, %c0_43] : memref<448x64xf32, #tpu.memory_space<vmem>>, vector<64x64xf32>
    %cst_44 = arith.constant dense<0.000000e+00> : vector<32x64xf32>
    %72 = tpu.matmul %70, %71, %cst_44 {dimension_numbers = #tpu.dot_dimension_numbers<[1], [0], [0], [1], [0, 0, 1, 1], [], []>} : vector<32x64xf32>, vector<64x64xf32>, vector<32x64xf32> -> vector<32x64xf32>
    %c5 = arith.constant 5 : index
    %c0_45 = arith.constant 0 : index
    %73 = vector.load %arg5[%c5, %c0_45] : memref<8x64xf32, #tpu.memory_space<vmem>>, vector<1x64xf32>
    %74 = vector.broadcast %73 : vector<1x64xf32> to vector<32x64xf32>
    %75 = arith.addf %72, %74 : vector<32x64xf32>
    %cst_46 = arith.constant 0.000000e+00 : f32
    %76 = vector.broadcast %cst_46 : f32 to vector<32x64xf32>
    %77 = arith.maximumf %75, %76 : vector<32x64xf32>
    %78 = tpu.concatenate %77, %35 in 1 : vector<32x64xf32>, vector<32x64xf32> -> vector<32x128xf32>
    %c0_47 = arith.constant 0 : index
    %c0_48 = arith.constant 0 : index
    %79 = vector.load %arg6[%c0_47, %c0_48] : memref<32x128xf32, #tpu.memory_space<vmem>>, vector<32x128xf32>
    tpu.vector_store %arg6[%c0_47, %c0_48], %78 {strides = array<i32>} : memref<32x128xf32, #tpu.memory_space<vmem>>, vector<32x128xf32>,
    return
  }
  func.func @transform_0(%arg0: i32) -> (i32, i32) {
    %c0_i32 = arith.constant 0 : i32
    %c0_i32_0 = arith.constant 0 : i32
    %c0_i32_1 = arith.constant 0 : i32
    return %c0_i32, %c0_i32_0 : i32, i32
  }
  func.func @transform_1(%arg0: i32) -> (i32, i32) {
    %c0_i32 = arith.constant 0 : i32
    %c0_i32_0 = arith.constant 0 : i32
    %c0_i32_1 = arith.constant 0 : i32
    return %c0_i32, %c0_i32_0 : i32, i32
  }
  func.func @transform_2(%arg0: i32) -> (i32, i32) {
    %c0_i32 = arith.constant 0 : i32
    %c0_i32_0 = arith.constant 0 : i32
    %c0_i32_1 = arith.constant 0 : i32
    return %c0_i32, %c0_i32_0 : i32, i32
  }
  func.func @transform_3(%arg0: i32) -> (i32, i32) {
    %c0_i32 = arith.constant 0 : i32
    %c0_i32_0 = arith.constant 0 : i32
    %c0_i32_1 = arith.constant 0 : i32
    return %c0_i32, %c0_i32_0 : i32, i32
  }
  func.func @transform_4(%arg0: i32) -> (i32, i32) {
    %c0_i32 = arith.constant 0 : i32
    %c0_i32_0 = arith.constant 0 : i32
    %c0_i32_1 = arith.constant 0 : i32
    return %c0_i32, %c0_i32_0 : i32, i32
  }
  func.func @transform_5(%arg0: i32) -> (i32, i32) {
    %c0_i32 = arith.constant 0 : i32
    %c0_i32_0 = arith.constant 0 : i32
    %c0_i32_1 = arith.constant 0 : i32
    return %c0_i32, %c0_i32_0 : i32, i32
  }
}

</mosaic_0001>

<bundles_post_ra>
// kernel: batch_graph_triple_conv.1
= control target key start
LH: loop header
LB: loop body
LE: loop exit
PB: predicated region body
PF: predicated region fallthrough
CT: control target
= control target key end

     0   :  { %v23_v0 = vlaneseq  ;;  %v706_v7 = vmov 0.0   ;;  %vm73_vm4 = vcmask 261120   ;;  %vm135_vm5 = vcmask 523264   ;;  %s707_s17 = smov 64   ;;  %s1084_s2 = inlined_call_operand.vmem [shape: s32[8,32], index: 2, kind: input, shape index: {}]   ;;  %s1085_s0 = inlined_call_operand.vmem [shape: f32[32,64], index: 0, kind: input, shape index: {}]   ;;  %s1086_s3 = inlined_call_operand.vmem [shape: f32[448,64], index: 3, kind: input, shape index: {}]   ;;  %s1087_s1 = inlined_call_operand.vmem [shape: f32[32,64], index: 1, kind: input, shape index: {}]   ;;  %s1088_s4 = inlined_call_operand.vmem [shape: f32[8,64], index: 4, kind: input, shape index: {}]   ;;  %s1089_s5 = inlined_call_operand.vmem [shape: f32[32,128], index: 5, kind: output, shape index: {}]  }
   0x1   :  { %v689_v1 = vld [vmem:[%s1084_s2] ss:$0 sm:$0xff]  ;;  %v40_v2 = vld [vmem:[%s1085_s0 + $0x18] sm:$0xff]  ;;  %v39_v4 = vld [vmem:[%s1085_s0 + $0x10] sm:$0xff] }
   0x2   :  { %v744_v3 = vshrl.u32 %v23_v0, 7  ;;  %98 = vmatpush.msra.mxu0 %v40_v2  ;;  %675 = vmatpush.msra.mxu3 %v40_v2  ;;  %v38_v5 = vld [vmem:[%s1085_s0 + $0x8] sm:$0xff]  ;;  %v37_v14 = vld [vmem:[%s1085_s0] sm:$0xff]  ;;  %v134_v15 = vld [vmem:[%s1086_s3 + $0x78] sm:$0xff] }
   0x3   :  { %v133_v16 = vld [vmem:[%s1086_s3 + $0x70] sm:$0xff]  ;;  %679 = vmatpush.msra.mxu2 %v134_v15  ;;  %156 = vmatpush.msra.mxu1 %v134_v15  ;;  %v132_v17 = vld [vmem:[%s1086_s3 + $0x68] sm:$0xff]  ;;  %v131_v18 = vld [vmem:[%s1086_s3 + $0x60] sm:$0xff] }
   0x4   :  { %vm29_vm0 = vcmp.eq.s32.totalorder %v744_v3, %v689_v1  ;;  %v754_v6 = vadd.s32 8, %v744_v3  ;;  %99 = vmatpush.msra.mxu0 %v39_v4  ;;  %676 = vmatpush.msra.mxu3 %v39_v4  ;;  %v760_v10 = vadd.s32 16, %v744_v3  ;;  %v765_v12 = vadd.s32 24, %v744_v3  ;;  %v130_v19 = vld [vmem:[%s1086_s3 + $0x58] sm:$0xff]  ;;  %v129_v21 = vld [vmem:[%s1086_s3 + $0x50] sm:$0xff]  ;;  %v128_v22 = vld [vmem:[%s1086_s3 + $0x48] sm:$0xff] }
   0x5   :  { %v33_v8 = vsel %vm29_vm0, 1.0, %v706_v7  ;;  %680 = vmatpush.msra.mxu2 %v133_v16  ;;  %157 = vmatpush.msra.mxu1 %v133_v16  ;;  %v127_v23 = vld [vmem:[%s1086_s3 + $0x40] sm:$0xff]  ;;  %v125_v24 = vld [vmem:[%s1087_s1 + $0x10] sm:$0xff]  ;;  %v122_v25 = vld [vmem:[%s1086_s3 + $0x38] sm:$0xff] }
   0x6   :  { %41 = vxpose.xlu0.b32.start [1/4] (short) (narrow) %v33_v8, 32  ;;  %100 = vmatpush.msra.mxu0 %v38_v5  ;;  %vm30_vm1 = vcmp.eq.s32.totalorder %v754_v6, %v689_v1  ;;  %vm31_vm2 = vcmp.eq.s32.totalorder %v760_v10, %v689_v1  ;;  %vm32_vm3 = vcmp.eq.s32.totalorder %v765_v12, %v689_v1  ;;  %v121_v27 = vld [vmem:[%s1086_s3 + $0x30] sm:$0xff]  ;;  %v120_v28 = vld [vmem:[%s1086_s3 + $0x28] sm:$0xff]  ;;  %v119_v29 = vld [vmem:[%s1086_s3 + $0x20] sm:$0xff] }
   0x7   :  { %677 = vmatpush.msra.mxu3 %v38_v5  ;;  %v34_v9 = vsel %vm30_vm1, 1.0, %v706_v7  ;;  %v35_v11 = vsel %vm31_vm2, 1.0, %v706_v7  ;;  %v36_v13 = vsel %vm32_vm3, 1.0, %v706_v7  ;;  %681 = vmatpush.msra.mxu2 %v132_v17  ;;  %v126_v30 = vld [vmem:[%s1087_s1 + $0x18] sm:$0xff]  ;;  %v117_v33 = vld [vmem:[%s1086_s3 + $0x10] sm:$0xff]  ;;  %v116_v34 = vld [vmem:[%s1086_s3 + $0x8] sm:$0xff] }
   0x8   :  { %101 = vmatpush.msra.mxu0 %v37_v14  ;;  %158 = vmatpush.msra.mxu1 %v132_v17  ;;  %v118_v31 = vld [vmem:[%s1086_s3 + $0x18] sm:$0xff]  ;;  %v115_v36 = vld [vmem:[%s1086_s3] sm:$0xff]  ;;  %v124_v38 = vld [vmem:[%s1087_s1 + $0x8] sm:$0xff] }
   0x9   :  { %678 = vmatpush.msra.mxu3 %v37_v14  ;;  %682 = vmatpush.msra.mxu2 %v131_v18  ;;  %v123_v37 = vld [vmem:[%s1087_s1] sm:$0xff]  ;;  %v235_v39 = vld [vmem:[%s1086_s3 + $0xb8] sm:$0xff]  ;;  %v234_v43 = vld [vmem:[%s1086_s3 + $0xb0] sm:$0xff] }
   0xa   :  { %159 = vmatpush.msra.mxu1 %v131_v18  ;;  %v290_v40 = vld [vmem:[%s1086_s3 + $0xf8] sm:$0xff]  ;;  %v289_v44 = vld [vmem:[%s1086_s3 + $0xf0] sm:$0xff]  ;;  %v233_v46 = vld [vmem:[%s1086_s3 + $0xa8] sm:$0xff] }
   0xb   :  { %683 = vmatpush.msra.mxu2 %v130_v19  ;;  %v333_v41 = vld [vmem:[%s1086_s3 + $0x138] sm:$0xff]  ;;  %258 = vmatpush.msrb.mxu3 %v235_v39  ;;  %v332_v45 = vld [vmem:[%s1086_s3 + $0x130] sm:$0xff]  ;;  %v288_v47 = vld [vmem:[%s1086_s3 + $0xe8] sm:$0xff] }
   0xc   :  { %160 = vmatpush.msra.mxu1 %v130_v19  ;;  %301 = vmatpush.msrb.mxu0 %v290_v40  ;;  %v331_v48 = vld [vmem:[%s1086_s3 + $0x128] sm:$0xff]  ;;  %v232_v49 = vld [vmem:[%s1086_s3 + $0xa0] sm:$0xff]  ;;  %v231_v55 = vld [vmem:[%s1086_s3 + $0x98] sm:$0xff] }
   0xd   :  { %684 = vmatpush.msra.mxu2 %v129_v21  ;;  %259 = vmatpush.msrb.mxu3 %v234_v43  ;;  %v287_v50 = vld [vmem:[%s1086_s3 + $0xe0] sm:$0xff]  ;;  %v286_v56 = vld [vmem:[%s1086_s3 + $0xd8] sm:$0xff]  ;;  %v230_v58 = vld [vmem:[%s1086_s3 + $0x90] sm:$0xff] }
   0xe   :  { %42 = vxpose.xlu0.b32.cont [2/4] (short) (narrow) %v34_v9, 32  ;;  %161 = vmatpush.msra.mxu1 %v129_v21  ;;  %v330_v51 = vld [vmem:[%s1086_s3 + $0x120] sm:$0xff]  ;;  %v329_v57 = vld [vmem:[%s1086_s3 + $0x118] sm:$0xff]  ;;  %v285_v59 = vld [vmem:[%s1086_s3 + $0xd0] sm:$0xff] }
   0xf   :  { %685 = vmatpush.msra.mxu2 %v128_v22  ;;  %302 = vmatpush.msrb.mxu0 %v289_v44  ;;  %v328_v60 = vld [vmem:[%s1086_s3 + $0x110] sm:$0xff]  ;;  %v229_v61 = vld [vmem:[%s1086_s3 + $0x88] sm:$0xff]  ;;  %v228_v0 = vld [vmem:[%s1086_s3 + $0x80] sm:$0xff] }
  0x10   :  { %162 = vmatpush.msra.mxu1 %v128_v22  ;;  %260 = vmatpush.msrb.mxu3 %v233_v46  ;;  %v284_v62 = vld [vmem:[%s1086_s3 + $0xc8] sm:$0xff]  ;;  %v283_v1 = vld [vmem:[%s1086_s3 + $0xc0] sm:$0xff] }
  0x11   :  { %686 = vmatpush.msra.mxu2 %v127_v23  ;;  %303 = vmatpush.msrb.mxu0 %v288_v47  ;;  %v327_v63 = vld [vmem:[%s1086_s3 + $0x108] sm:$0xff]  ;;  %v326_v2 = vld [vmem:[%s1086_s3 + $0x100] sm:$0xff] }
  0x12   :  { %163 = vmatpush.msra.mxu1 %v127_v23  ;;  %641 = vmatmul.msk.f32.vlgmr.msra.gmra.mxu2 %vm135_vm5, %v125_v24  ;;  %v690_v9 = vld [vmem:[%s1088_s4] ss:$0 sm:$0xff]  ;;  %v691_v17 = vld [vmem:[%s1084_s2 + $0x1] ss:$0 sm:$0xff]  ;;  %v692_v18 = vld [vmem:[%s1084_s2 + $0x2] ss:$0 sm:$0xff] }
  0x13   :  { %197 = vmatpush.msrb.mxu2 %v122_v25  ;;  %639 = vmatmul.msk.f32.vlgmr.msra.gmra.mxu1 %vm135_vm5, %v123_v37  ;;  %vm372_vm6 = vcmp.eq.s32.totalorder %v760_v10, %v691_v17  ;;  %vm381_vm7 = vcmp.eq.s32.totalorder %v760_v10, %v692_v18  ;;  %vm370_vm8 = vcmp.eq.s32.totalorder %v744_v3, %v691_v17 }
  0x14   :  { %344 = vmatpush.msrb.mxu1 %v333_v41  ;;  %261 = vmatpush.msrb.mxu3 %v232_v49  ;;  %vm379_vm9 = vcmp.eq.s32.totalorder %v744_v3, %v692_v18  ;;  %v933_v21 = vsel %vm372_vm6, 1.0, %v706_v7  ;;  %v936_v22 = vsel %vm381_vm7, 1.0, %v706_v7  ;;  %v939_v23 = vsel %vm370_vm8, 1.0, %v706_v7 }
  0x15   :  { %198 = vmatpush.msrb.mxu2 %v121_v27  ;;  %304 = vmatpush.msrb.mxu0 %v287_v50  ;;  %v471_v24 = vadd.f32 %v936_v22, %v933_v21  ;;  %v944_v25 = vsel %vm379_vm9, 1.0, %v706_v7  ;;  %vm373_vm10 = vcmp.eq.s32.totalorder %v765_v12, %v691_v17  ;;  %vm382_vm11 = vcmp.eq.s32.totalorder %v765_v12, %v692_v18 }
  0x16   :  { %43 = vxpose.xlu0.b32.cont [3/4] (short) (narrow) %v35_v11, 32  ;;  %345 = vmatpush.msrb.mxu1 %v332_v45  ;;  %v469_v10 = vadd.f32 %v944_v25, %v939_v23  ;;  %v954_v27 = vsel %vm382_vm11, 1.0, %v706_v7  ;;  %vm371_vm12 = vcmp.eq.s32.totalorder %v754_v6, %v691_v17  ;;  %vm380_vm13 = vcmp.eq.s32.totalorder %v754_v6, %v692_v18 }
  0x17   :  { %199 = vmatpush.msrb.mxu2 %v120_v28  ;;  %262 = vmatpush.msrb.mxu3 %v231_v55  ;;  %v479_v28 = vsel %vm73_vm4, %v471_v24, 0.0 }
  0x18   :  { %346 = vmatpush.msrb.mxu1 %v331_v48  ;;  %305 = vmatpush.msrb.mxu0 %v286_v56  ;;  %v473_v12 = vsel %vm73_vm4, %v469_v10, 0.0  ;;  %v499_v10 = vld [vmem:[%s1086_s3 + $0x150] sm:$0xff] }
  0x19   :  { %200 = vmatpush.msrb.mxu2 %v119_v29  ;;  %263 = vmatpush.msrb.mxu3 %v230_v58  ;;  %v694_v58 = vld [vmem:[%s1088_s4 + $0x3] ss:$0 sm:$0xff] }
  0x1a   :  { %642 = vmatmul.msk.f32.gmra.mxu2 %vm135_vm5, %v126_v30  ;;  %347 = vmatpush.msrb.mxu1 %v330_v51  ;;  %v961_v30 = vsel %vm371_vm12, 1.0, %v706_v7 }
  0x1b   :  { %201 = vmatpush.msrb.mxu2 %v118_v31  ;;  %640 = vmatmul.msk.f32.gmra.mxu1 %vm135_vm5, %v124_v38  ;;  %v964_v31 = vsel %vm380_vm13, 1.0, %v706_v7 }
  0x1c   :  { %348 = vmatpush.msrb.mxu1 %v329_v57  ;;  %306 = vmatpush.msrb.mxu0 %v285_v59  ;;  %v470_v6 = vadd.f32 %v964_v31, %v961_v30 }
  0x1d   :  { %202 = vmatpush.msrb.mxu2 %v117_v33  ;;  %264 = vmatpush.msrb.mxu3 %v229_v61 }
  0x1e   :  { %44 = vxpose.xlu0.b32.end [4/4] (short) (narrow) %v36_v13, 32  ;;  %349 = vmatpush.msrb.mxu1 %v328_v60 }
  0x1f   :  { %203 = vmatpush.msrb.mxu2 %v116_v34  ;;  %307 = vmatpush.msrb.mxu0 %v284_v62  ;;  %v476_v34 = vsel %vm73_vm4, %v470_v6, 0.0 }
  0x20   :  { %350 = vmatpush.msrb.mxu1 %v327_v63  ;;  %265 = vmatpush.msrb.mxu3 %v228_v0 }
  0x21   :  { %204 = vmatpush.msrb.mxu2 %v115_v36  ;;  %308 = vmatpush.msrb.mxu0 %v283_v1 }
  0x22   :  { %351 = vmatpush.msrb.mxu1 %v326_v2  ;;  %480 = vadd.xlane.f32.xlu2 %v479_v28 }
  0x23   :  { %474 = vadd.xlane.f32.xlu1 %v473_v12 }
  0x2b   :  { %477 = vadd.xlane.f32.xlu1 %v476_v34 }
  0x90   :  { %v165_v8 = vpop.f32.mrf.mxu1 }
  0x95   :  { %v171_v4 = vpop.f32.mrf.mxu2 }
  0x96   :  { %v475_v28 = vpop.xlane.xlu1 %474 }
  0x98   :  { %v168_v16 = vpop.f32.mrf.mxu1 }
  0x9d   :  { %v174_v5 = vpop.f32.mrf.mxu2 }
  0xaa   :  { %v57_v20 = vpop.trf.xlu0 }
  0xab   :  { %635 = vmatmul.msk.f32.vlgmr.msra.gmra.mxu0 %vm73_vm4, %v57_v20 }
  0xb2   :  { %v58_v26 = vpop.trf.xlu0 }
  0xb3   :  { %636 = vmatmul.msk.f32.gmra.mxu0 %vm73_vm4, %v58_v26  ;;  %v951_v26 = vsel %vm373_vm10, 1.0, %v706_v7 }
  0xba   :  { %v59_v32 = vpop.trf.xlu0 }
  0xbb   :  { %637 = vmatmul.msk.f32.vlgmr.msra.gmra.mxu3 %vm73_vm4, %v59_v32  ;;  %v472_v32 = vadd.f32 %v954_v27, %v951_v26 }
  0xbd   :  { %v482_v33 = vsel %vm73_vm4, %v472_v32, 0.0  ;;  %v558_v32 = vld [vmem:[%s1086_s3 + $0x1b0] sm:$0xff] }
  0xbe   :  { %483 = vadd.xlane.f32.xlu2 %v482_v33  ;;  %v557_v33 = vld [vmem:[%s1086_s3 + $0x1a8] sm:$0xff] }
  0xc2   :  { %v60_v35 = vpop.trf.xlu0 }
  0xc3   :  { %638 = vmatmul.msk.f32.gmra.mxu3 %vm73_vm4, %v60_v35 }
 0x128   :  { %v103_v42 = vpop.f32.mrf.mxu0 }
 0x129   :  { %643 = vmatmul.msk.f32.vlgmr.msrb.gmra.mxu2 %vm135_vm5, %v103_v42  ;;  %v693_v42 = vld [vmem:[%s1088_s4 + $0x2] ss:$0 sm:$0xff] }
 0x130   :  { %v106_v52 = vpop.f32.mrf.mxu0 }
 0x131   :  { %644 = vmatmul.msk.f32.gmra.mxu2 %vm135_vm5, %v106_v52 }
 0x13e   :  { %v109_v53 = vpop.f32.mrf.mxu3 }
 0x13f   :  { %645 = vmatmul.msk.f32.gmra.mxu2 %vm135_vm5, %v109_v53 }
 0x146   :  { %v112_v54 = vpop.f32.mrf.mxu3 }
 0x147   :  { %646 = vmatmul.msk.f32.gmra.mxu2 %vm135_vm5, %v112_v54 }
 0x1ac   :  { %v206_v11 = vpop.f32.mrf.mxu2 }
 0x1ad   :  { %v207_v13 = vadd.f32 %v206_v11, %v165_v8 }
 0x1af   :  { %v220_v14 = vadd.f32 %v690_v9, %v207_v13 }
 0x1b1   :  { %v224_v15 = vmax.f32 %v220_v14, 0.0 }
 0x1b3   :  { %647 = vmatmul.msk.f32.vlgmr.msrb.gmra.mxu3 %vm135_vm5, %v224_v15  ;;  %651 = vmatmul.msk.f32.vlgmr.msrb.gmra.mxu0 %vm135_vm5, %v224_v15 }
 0x1b4   :  { %655 = vmatmul.msk.f32.vlgmr.msrb.gmra.mxu1 %vm135_vm5, %v224_v15  ;;  %v209_v19 = vpop.f32.mrf.mxu2 }
 0x1b5   :  { %v210_v20 = vadd.f32 %v209_v19, %v168_v16 }
 0x1b7   :  { %v221_v3 = vadd.f32 %v690_v9, %v210_v20 }
 0x1b9   :  { %v225_v29 = vmax.f32 %v221_v3, 0.0  ;;  %v500_v3 = vld [vmem:[%s1086_s3 + $0x158] sm:$0xff] }
 0x1bb   :  { %648 = vmatmul.msk.f32.gmra.mxu3 %vm135_vm5, %v225_v29  ;;  %652 = vmatmul.msk.f32.gmra.mxu0 %vm135_vm5, %v225_v29 }
 0x1bc   :  { %656 = vmatmul.msk.f32.gmra.mxu1 %vm135_vm5, %v225_v29  ;;  %v485_v29 = vmax.f32 %v475_v28, 1.0 }
 0x1be   :  { %698 = vrcp.f32 %v485_v29 }
 0x1c2   :  { %v212_v7 = vpop.f32.mrf.mxu2 }
 0x1c3   :  { %v213_v35 = vadd.f32 %v212_v7, %v171_v4  ;;  %v695_v4 = vld [vmem:[%s1088_s4 + $0x1] ss:$0 sm:$0xff] }
 0x1c4   :  { %v699_v34 = vpop.eup %698 }
 0x1c5   :  { %v222_v36 = vadd.f32 %v690_v9, %v213_v35 }
 0x1c7   :  { %v226_v37 = vmax.f32 %v222_v36, 0.0  ;;  %v556_v36 = vld [vmem:[%s1086_s3 + $0x1a0] sm:$0xff] }
 0x1c9   :  { %649 = vmatmul.msk.f32.gmra.mxu3 %vm135_vm5, %v226_v37  ;;  %653 = vmatmul.msk.f32.gmra.mxu0 %vm135_vm5, %v226_v37 }
 0x1ca   :  { %657 = vmatmul.msk.f32.gmra.mxu1 %vm135_vm5, %v226_v37  ;;  %v215_v38 = vpop.f32.mrf.mxu2  ;;  %v481_v37 = vpop.xlane.xlu2 %480 }
 0x1cb   :  { %v216_v39 = vadd.f32 %v215_v38, %v174_v5 }
 0x1cd   :  { %v223_v40 = vadd.f32 %v690_v9, %v216_v39 }
 0x1cf   :  { %v227_v41 = vmax.f32 %v223_v40, 0.0  ;;  %v555_v40 = vld [vmem:[%s1086_s3 + $0x198] sm:$0xff] }
 0x1d1   :  { %650 = vmatmul.msk.f32.gmra.mxu3 %vm135_vm5, %v227_v41  ;;  %654 = vmatmul.msk.f32.gmra.mxu0 %vm135_vm5, %v227_v41 }
 0x1d2   :  { %658 = vmatmul.msk.f32.gmra.mxu1 %vm135_vm5, %v227_v41  ;;  %v487_v41 = vmax.f32 %v481_v37, 1.0 }
 0x230   :  { %v310_v43 = vpop.f32.mrf.mxu0 }
 0x231   :  { %v311_v44 = vadd.f32 %v693_v42, %v310_v43  ;;  %v353_v46 = vpop.f32.mrf.mxu1 }
 0x232   :  { %v354_v5 = vadd.f32 %v694_v58, %v353_v46 }
 0x233   :  { %v322_v45 = vmax.f32 %v311_v44, 0.0 }
 0x234   :  { %v365_v17 = vmax.f32 %v354_v5, 0.0 }
 0x235   :  { %611 = vrot.lane.b32.xlu1 %v322_v45, %s707_s17 }
 0x236   :  { %v267_v49 = vpop.f32.mrf.mxu3 }
 0x237   :  { %v268_v18 = vadd.f32 %v695_v4, %v267_v49 }
 0x238   :  { %v313_v47 = vpop.f32.mrf.mxu0 }
 0x239   :  { %v314_v48 = vadd.f32 %v693_v42, %v313_v47  ;;  %v356_v51 = vpop.f32.mrf.mxu1  ;;  %v279_v24 = vmax.f32 %v268_v18, 0.0  ;;  %v484_v47 = vpop.xlane.xlu2 %483 }
 0x23a   :  { %v357_v1 = vadd.f32 %v694_v58, %v356_v51 }
 0x23b   :  { %v323_v50 = vmax.f32 %v314_v48, 0.0  ;;  %v488_v48 = vmax.f32 %v484_v47, 1.0 }
 0x23c   :  { %v366_v14 = vmax.f32 %v357_v1, 0.0 }
 0x23d   :  { %613 = vrot.lane.b32.xlu2 %v323_v50, %s707_s17 }
 0x23e   :  { %v270_v52 = vpop.f32.mrf.mxu3 }
 0x23f   :  { %v271_v15 = vadd.f32 %v695_v4, %v270_v52 }
 0x241   :  { %v280_v20 = vmax.f32 %v271_v15, 0.0  ;;  %v697_v15 = vld [vmem:[%s1088_s4 + $0x5] ss:$0 sm:$0xff] }
 0x246   :  { %v316_v53 = vpop.f32.mrf.mxu0 }
 0x247   :  { %v317_v54 = vadd.f32 %v693_v42, %v316_v53  ;;  %v359_v55 = vpop.f32.mrf.mxu1 }
 0x248   :  { %v360_v62 = vadd.f32 %v694_v58, %v359_v55 }
 0x249   :  { %v324_v56 = vmax.f32 %v317_v54, 0.0 }
 0x24a   :  { %v367_v8 = vmax.f32 %v360_v62, 0.0 }
 0x24b   :  { %615 = vrot.lane.b32.xlu0 %v324_v56, %s707_s17 }
 0x24c   :  { %v273_v57 = vpop.f32.mrf.mxu3 }
 0x24d   :  { %v274_v11 = vadd.f32 %v695_v4, %v273_v57 }
 0x24e   :  { %v319_v59 = vpop.f32.mrf.mxu0 }
 0x24f   :  { %v320_v60 = vadd.f32 %v693_v42, %v319_v59  ;;  %v362_v61 = vpop.f32.mrf.mxu1  ;;  %v281_v19 = vmax.f32 %v274_v11, 0.0  ;;  %v553_v59 = vld [vmem:[%s1086_s3 + $0x188] sm:$0xff] }
 0x250   :  { %v363_v63 = vadd.f32 %v694_v58, %v362_v61  ;;  %v554_v58 = vld [vmem:[%s1086_s3 + $0x190] sm:$0xff]  ;;  %v696_v61 = vld [vmem:[%s1088_s4 + $0x4] ss:$0 sm:$0xff] }
 0x251   :  { %v325_v0 = vmax.f32 %v320_v60, 0.0  ;;  %v552_v60 = vld [vmem:[%s1086_s3 + $0x180] sm:$0xff] }
 0x252   :  { %v368_v2 = vmax.f32 %v363_v63, 0.0 }
 0x253   :  { %617 = vrot.lane.b32.xlu2 %v325_v0, %s707_s17 }
 0x254   :  { %411 = vmatpush.msra.mxu2 %v368_v2  ;;  %v276_v9 = vpop.f32.mrf.mxu3 }
 0x255   :  { %v277_v13 = vadd.f32 %v695_v4, %v276_v9 }
 0x256   :  { %412 = vmatpush.msra.mxu2 %v367_v8 }
 0x257   :  { %v282_v16 = vmax.f32 %v277_v13, 0.0 }
 0x258   :  { %413 = vmatpush.msra.mxu2 %v366_v14 }
 0x259   :  { %452 = vmatpush.msra.mxu3 %v282_v16 }
 0x25a   :  { %414 = vmatpush.msra.mxu2 %v365_v17 }
 0x25b   :  { %453 = vmatpush.msra.mxu3 %v281_v19  ;;  %659 = vmatmul.msk.f32.vlgmr.msra.gmra.mxu2 %vm73_vm4, %v944_v25  ;;  %v503_v25 = vld [vmem:[%s1086_s3 + $0x170] sm:$0xff] }
 0x25d   :  { %454 = vmatpush.msra.mxu3 %v280_v20 }
 0x25f   :  { %455 = vmatpush.msra.mxu3 %v279_v24 }
 0x260   :  { %663 = vmatmul.msk.f32.vlgmr.msra.gmra.mxu3 %vm73_vm4, %v939_v23  ;;  %v504_v23 = vld [vmem:[%s1086_s3 + $0x178] sm:$0xff] }
 0x261   :  { %527 = vmatpush.msra.mxu0 %v504_v23 }
 0x263   :  { %660 = vmatmul.msk.f32.gmra.mxu2 %vm73_vm4, %v964_v31  ;;  %528 = vmatpush.msra.mxu0 %v503_v25  ;;  %v559_v31 = vld [vmem:[%s1086_s3 + $0x1b8] sm:$0xff] }
 0x264   :  { %582 = vmatpush.msra.mxu1 %v559_v31 }
 0x266   :  { %583 = vmatpush.msra.mxu1 %v558_v32 }
 0x268   :  { %664 = vmatmul.msk.f32.gmra.mxu3 %vm73_vm4, %v961_v30  ;;  %v478_v30 = vpop.xlane.xlu1 %477  ;;  %584 = vmatpush.msra.mxu1 %v557_v33 }
 0x269   :  { %v486_v6 = vmax.f32 %v478_v30, 1.0 }
 0x26a   :  { %585 = vmatpush.msra.mxu1 %v556_v36 }
 0x26b   :  { %661 = vmatmul.msk.f32.gmra.mxu2 %vm73_vm4, %v936_v22  ;;  %v502_v22 = vld [vmem:[%s1086_s3 + $0x168] sm:$0xff]  ;;  %700 = vrcp.f32 %v486_v6 }
 0x26c   :  { %529 = vmatpush.msra.mxu0 %v502_v22  ;;  %586 = vmatpush.msra.mxu1 %v555_v40  ;;  %702 = vrcp.f32 %v487_v41 }
 0x26d   :  { %704 = vrcp.f32 %v488_v48 }
 0x26e   :  { %587 = vmatpush.msra.mxu1 %v554_v58 }
 0x270   :  { %665 = vmatmul.msk.f32.gmra.mxu3 %vm73_vm4, %v933_v21  ;;  %v501_v21 = vld [vmem:[%s1086_s3 + $0x160] sm:$0xff]  ;;  %588 = vmatpush.msra.mxu1 %v553_v59 }
 0x271   :  { %530 = vmatpush.msra.mxu0 %v501_v21  ;;  %v701_v42 = vpop.eup %700 }
 0x272   :  { %v703_v49 = vpop.eup %702  ;;  %589 = vmatpush.msra.mxu1 %v552_v60 }
 0x273   :  { %662 = vmatmul.msk.f32.gmra.mxu2 %vm73_vm4, %v954_v27  ;;  %531 = vmatpush.msra.mxu0 %v500_v3  ;;  %v497_v27 = vld [vmem:[%s1086_s3 + $0x140] sm:$0xff]  ;;  %v705_v54 = vpop.eup %704 }
 0x275   :  { %532 = vmatpush.msra.mxu0 %v499_v10 }
 0x278   :  { %666 = vmatmul.msk.f32.gmra.mxu3 %vm73_vm4, %v951_v26  ;;  %v498_v26 = vld [vmem:[%s1086_s3 + $0x148] sm:$0xff] }
 0x279   :  { %533 = vmatpush.msra.mxu0 %v498_v26 }
 0x27b   :  { %534 = vmatpush.msra.mxu0 %v497_v27 }
 0x297   :  { %v614_v22 = vpop.permute.xlu2 %613 }
 0x2a7   :  { %v612_v19 = vpop.permute.xlu1 %611 }
 0x2ad   :  { %v618_v31 = vpop.permute.xlu2 %617 }
 0x2bd   :  { %v616_v27 = vpop.permute.xlu0 %615 }
 0x2de   :  { %v416_v12 = vpop.f32.mrf.mxu2 }
 0x2e3   :  { %v457_v7 = vpop.f32.mrf.mxu3 }
 0x2e4   :  { %v458_v35 = vadd.f32 %v457_v7, %v416_v12 }
 0x2e6   :  { %v493_v38 = vmul.f32 %v699_v34, %v458_v35  ;;  %v419_v39 = vpop.f32.mrf.mxu2 }
 0x2e8   :  { %667 = vmatmul.msk.f32.vlgmr.msra.gmra.mxu0 %vm135_vm5, %v493_v38 }
 0x2eb   :  { %v460_v43 = vpop.f32.mrf.mxu3 }
 0x2ec   :  { %v461_v44 = vadd.f32 %v460_v43, %v419_v39 }
 0x2ee   :  { %v494_v45 = vmul.f32 %v701_v42, %v461_v44  ;;  %v422_v46 = vpop.f32.mrf.mxu2 }
 0x2f0   :  { %668 = vmatmul.msk.f32.gmra.mxu0 %vm135_vm5, %v494_v45 }
 0x2f3   :  { %v463_v50 = vpop.f32.mrf.mxu3 }
 0x2f4   :  { %v464_v51 = vadd.f32 %v463_v50, %v422_v46 }
 0x2f6   :  { %v495_v52 = vmul.f32 %v703_v49, %v464_v51  ;;  %v425_v53 = vpop.f32.mrf.mxu2 }
 0x2f8   :  { %669 = vmatmul.msk.f32.gmra.mxu0 %vm135_vm5, %v495_v52 }
 0x2fb   :  { %v466_v55 = vpop.f32.mrf.mxu3 }
 0x2fc   :  { %v467_v56 = vadd.f32 %v466_v55, %v425_v53 }
 0x2fe   :  { %v496_v57 = vmul.f32 %v705_v54, %v467_v56 }
 0x300   :  { %670 = vmatmul.msk.f32.gmra.mxu0 %vm135_vm5, %v496_v57 }
 0x365   :  { %v536_v62 = vpop.f32.mrf.mxu0 }
 0x366   :  { %v537_v63 = vadd.f32 %v696_v61, %v536_v62 }
 0x368   :  { %v548_v0 = vmax.f32 %v537_v63, 0.0 }
 0x36a   :  { %671 = vmatmul.msk.f32.vlgmr.msra.gmra.mxu1 %vm135_vm5, %v548_v0 }
 0x36d   :  { %v539_v1 = vpop.f32.mrf.mxu0 }
 0x36e   :  { %v540_v2 = vadd.f32 %v696_v61, %v539_v1 }
 0x370   :  { %v549_v4 = vmax.f32 %v540_v2, 0.0 }
 0x372   :  { %672 = vmatmul.msk.f32.gmra.mxu1 %vm135_vm5, %v549_v4 }
 0x375   :  { %v542_v5 = vpop.f32.mrf.mxu0 }
 0x376   :  { %v543_v8 = vadd.f32 %v696_v61, %v542_v5 }
 0x378   :  { %v550_v9 = vmax.f32 %v543_v8, 0.0 }
 0x37a   :  { %673 = vmatmul.msk.f32.gmra.mxu1 %vm135_vm5, %v550_v9 }
 0x37d   :  { %v545_v11 = vpop.f32.mrf.mxu0 }
 0x37e   :  { %v546_v13 = vadd.f32 %v696_v61, %v545_v11 }
 0x380   :  { %v551_v14 = vmax.f32 %v546_v13, 0.0 }
 0x382   :  { %674 = vmatmul.msk.f32.gmra.mxu1 %vm135_vm5, %v551_v14 }
 0x3e7   :  { %v591_v16 = vpop.f32.mrf.mxu1 }
 0x3e8   :  { %v592_v17 = vadd.f32 %v697_v15, %v591_v16 }
 0x3ea   :  { %v603_v18 = vmax.f32 %v592_v17, 0.0 }
 0x3ec   :  { %v623_v20 = vsel %vm135_vm5, %v603_v18, %v612_v19 }
 0x3ed   :  { %627 = vst [vmem:[%s1089_s5] sm:$0xff] %v623_v20 }
 0x3ef   :  { %v594_v24 = vpop.f32.mrf.mxu1 }
 0x3f0   :  { %v595_v23 = vadd.f32 %v697_v15, %v594_v24 }
 0x3f2   :  { %v604_v25 = vmax.f32 %v595_v23, 0.0 }
 0x3f4   :  { %v624_v21 = vsel %vm135_vm5, %v604_v25, %v614_v22 }
 0x3f5   :  { %628 = vst [vmem:[%s1089_s5 + $0x8] sm:$0xff] %v624_v21 }
 0x3f7   :  { %v597_v3 = vpop.f32.mrf.mxu1 }
 0x3f8   :  { %v598_v10 = vadd.f32 %v697_v15, %v597_v3 }
 0x3fa   :  { %v605_v26 = vmax.f32 %v598_v10, 0.0 }
 0x3fc   :  { %v625_v28 = vsel %vm135_vm5, %v605_v26, %v616_v27 }
 0x3fd   :  { %629 = vst [vmem:[%s1089_s5 + $0x10] sm:$0xff] %v625_v28 }
 0x3ff   :  { %v600_v29 = vpop.f32.mrf.mxu1 }
 0x400   :  { %v601_v12 = vadd.f32 %v697_v15, %v600_v29 }
 0x402   :  { %v606_v30 = vmax.f32 %v601_v12, 0.0 }
 0x404   :  { %v626_v32 = vsel %vm135_vm5, %v606_v30, %v618_v31 }
 0x405   :  { %630 = vst [vmem:[%s1089_s5 + $0x18] sm:$0xff] %v626_v32 }

</bundles_post_ra>
